<compile_context>
chip_gen: v5e
topology: v5e:2x2
jax: 0.10.0
libtpu: 0.0.40
codegen_flags: <defaults>
</compile_context>

<pallas_src>
import jax
import jax.numpy as jnp
from jax.experimental import pallas as pl
from jax.experimental.pallas import tpu as pltpu

LANE = 128             # lane (fast) axis width
ROW_ALIGN = 32         # row granularity: int8 native tile is (32, 128)
MAX_BLOCK_ROWS = 512   # (512,128) f32 tile ~85% of HBM roofline; VMEM footprint is tiny
NUM_SPLITS = 2         # split the edge axis across TensorCores (v7x); harmless on 1-TC chips


def _round_up(x, m):
    return (x + m - 1) // m * m


def _smooth_loss_kernel(w_ref, d_ref, out_ref, pos_m, pos_s, neg_m, neg_s):
    """Streaming (online) masked logsumexp over the edge axis for one core's edge range.

    w_ref  : (BR, 128) f32 edge weights (-inf in padded lanes)
    d_ref  : (BR, 128) i8  mask: 1 -> labels differ (neg bucket), 0 -> same (pos bucket)
    out_ref: (1, 1, 2) f32 per-core partial [pos_lse, neg_lse]
    pos_m/pos_s/neg_m/neg_s: (1, 1) f32 running max / rescaled sum accumulators
    """
    t = pl.program_id(1)
    neg_inf = jnp.float32(-jnp.inf)

    @pl.when(t == 0)
    def _():
        pos_m[...] = jnp.full_like(pos_m, neg_inf)
        pos_s[...] = jnp.zeros_like(pos_s)
        neg_m[...] = jnp.full_like(neg_m, neg_inf)
        neg_s[...] = jnp.zeros_like(neg_s)

    w = w_ref[...]                                    # (BR, 128) f32
    diff = d_ref[...].astype(jnp.float32) != 0.0      # (BR, 128) bool

    # Per-bucket tile maxima (padded lanes are -inf in w, so they never win the max).
    w_pos = jnp.where(diff, neg_inf, w)
    w_neg = jnp.where(diff, w, neg_inf)
    m_pos_new = jnp.maximum(pos_m[...], jnp.max(w_pos, axis=(0, 1), keepdims=True))  # (1,1)
    m_neg_new = jnp.maximum(neg_m[...], jnp.max(w_neg, axis=(0, 1), keepdims=True))  # (1,1)

    # One exp per edge: select the running max of this edge's bucket; guard the -inf
    # padded lanes so exp contributes exactly 0 for them (avoids (-inf) - (-inf) = nan).
    m_sel = jnp.where(diff, m_neg_new, m_pos_new)     # (BR, 128) via broadcast
    arg = jnp.where(w == neg_inf, neg_inf, w - m_sel)
    e = jnp.exp(arg)

    s_pos_tile = jnp.sum(jnp.where(diff, 0.0, e), axis=(0, 1), keepdims=True)
    s_neg_tile = jnp.sum(jnp.where(diff, e, 0.0), axis=(0, 1), keepdims=True)

    # Online-logsumexp rescale of previously accumulated sums (scalar exps, negligible);
    # guard exp(-inf - (-inf)) -> nan when nothing has been seen yet.
    scale_pos = jnp.where(pos_m[...] == neg_inf, 0.0, jnp.exp(pos_m[...] - m_pos_new))
    scale_neg = jnp.where(neg_m[...] == neg_inf, 0.0, jnp.exp(neg_m[...] - m_neg_new))
    pos_s[...] = pos_s[...] * scale_pos + s_pos_tile
    neg_s[...] = neg_s[...] * scale_neg + s_neg_tile
    pos_m[...] = m_pos_new
    neg_m[...] = m_neg_new

    @pl.when(t == pl.num_programs(1) - 1)
    def _():
        pos_lse = pos_m[...] + jnp.log(pos_s[...])    # -inf if this core saw no pos edges
        neg_lse = neg_m[...] + jnp.log(neg_s[...])
        out_ref[0, 0:1, 0:1] = pos_lse
        out_ref[0, 0:1, 1:2] = neg_lse


def smooth_loss(edge_index, edge_weight, labels):
    """Pallas implementation of SmoothLoss.forward.

    Args:
      edge_index:  (2, E) int array of (source, target) node ids.
      edge_weight: (1, E) float array of edge weights.
      labels:      (B,)   int array of node labels.
    Returns:
      scalar float32 loss = softplus(logsumexp(pos) + logsumexp(neg)) / 8
    """
    edge_num = edge_index.shape[1]
    source = edge_index[0]
    target = edge_index[1]

    # Data-dependent gather + compare stay in JAX glue; only a 1-byte mask is streamed.
    diff = (labels[source] != labels[target]).astype(jnp.int8)      # 1 -> neg bucket
    w = edge_weight.reshape(-1).astype(jnp.float32)

    rows = pl.cdiv(edge_num, LANE)
    block_rows = min(MAX_BLOCK_ROWS, _round_up(pl.cdiv(rows, NUM_SPLITS), ROW_ALIGN))
    steps = pl.cdiv(rows, NUM_SPLITS * block_rows)
    rows_padded = NUM_SPLITS * steps * block_rows
    e_pad = rows_padded * LANE
    pad = e_pad - edge_num

    # Pad weights with -inf (-> exp = 0) and the mask with 0 so padded lanes fall into the
    # pos bucket but contribute nothing; no separate valid stream needed.
    # TODO(synk): for very large E the pad could be avoided via scalar-prefetched edge_num
    # + iota masking of the ragged last tile; kept as a pad here for simplicity.
    w2 = jnp.pad(w, (0, pad), constant_values=-jnp.inf).reshape(rows_padded, LANE)
    d2 = jnp.pad(diff, (0, pad)).reshape(rows_padded, LANE)

    edge_spec = pl.BlockSpec((block_rows, LANE), lambda c, t: (c * steps + t, 0))
    parts = pl.pallas_call(
        _smooth_loss_kernel,
        out_shape=jax.ShapeDtypeStruct((NUM_SPLITS, 1, 2), jnp.float32),
        grid_spec=pltpu.PrefetchScalarGridSpec(
            num_scalar_prefetch=0,
            grid=(NUM_SPLITS, steps),
            in_specs=[edge_spec, edge_spec],
            out_specs=pl.BlockSpec((1, 1, 2), lambda c, t: (c, 0, 0)),
            scratch_shapes=[pltpu.VMEM((1, 1), jnp.float32)] * 4,
        ),
        compiler_params=pltpu.CompilerParams(
            dimension_semantics=("parallel", "arbitrary")),
        cost_estimate=pl.CostEstimate(
            flops=8 * e_pad,
            transcendentals=e_pad,
            bytes_accessed=5 * e_pad + 8 * NUM_SPLITS),
    )(w2, d2)

    # Combine the two per-core partials (2 scalars per bucket) + softplus in JAX glue.
    parts = parts[:, 0, :]                            # (NUM_SPLITS, 2)
    pos_lse = jax.nn.logsumexp(parts[:, 0])
    neg_lse = jax.nn.logsumexp(parts[:, 1])
    return jax.nn.softplus(pos_lse + neg_lse) / 8.0


def _reference_smooth_loss(edge_index, edge_weight, labels):
    source = edge_index[0]
    target = edge_index[1]
    sl = labels[source]
    tl = labels[target]
    mask_neg = sl != tl
    mask_pos = ~mask_neg
    w = edge_weight.reshape(-1).astype(jnp.float32)
    pos = jax.nn.logsumexp(jnp.where(mask_pos, w, -jnp.inf))
    neg = jax.nn.logsumexp(jnp.where(mask_neg, w, -jnp.inf))
    return jax.nn.softplus(pos + neg) / 8.0


def _make_inputs(key, batch_size, edge_num, num_classes):
    k_src, k_tgt, k_w, k_lab = jax.random.split(key, 4)
    source = jax.random.randint(k_src, (edge_num,), 0, batch_size, dtype=jnp.int32)
    target = jax.random.randint(k_tgt, (edge_num,), 0, batch_size, dtype=jnp.int32)
    edge_index = jnp.stack([source, target], axis=0)                  # (2, E)
    edge_weight = jax.random.normal(k_w, (1, edge_num), jnp.float32)  # (1, E)
    labels = jax.random.randint(k_lab, (batch_size,), 0, num_classes, dtype=jnp.int32)
    return edge_index, edge_weight, labels


if __name__ == "__main__":
    key = jax.random.PRNGKey(0)
    loss_fn = jax.jit(smooth_loss)

    # Primary small test (E=200: single grid step per core, ragged padding exercised).
    edge_index, edge_weight, labels = _make_inputs(key, batch_size=8, edge_num=200,
                                                   num_classes=4)
    out = loss_fn(edge_index, edge_weight, labels)
    out = jax.block_until_ready(out)
    ref = _reference_smooth_loss(edge_index, edge_weight, labels)
    assert jnp.allclose(out, ref, rtol=1e-4, atol=1e-5), (out, ref)

    # Secondary check exercising the multi-step online accumulation path (steps > 1).
    big_e = NUM_SPLITS * MAX_BLOCK_ROWS * LANE + 1000
    edge_index_b, edge_weight_b, labels_b = _make_inputs(jax.random.PRNGKey(1),
                                                         batch_size=32, edge_num=big_e,
                                                         num_classes=5)
    out_b = jax.block_until_ready(loss_fn(edge_index_b, edge_weight_b, labels_b))
    ref_b = _reference_smooth_loss(edge_index_b, edge_weight_b, labels_b)
    assert jnp.allclose(out_b, ref_b, rtol=1e-4, atol=1e-5), (out_b, ref_b)

    print("KERNEL_OK")
</pallas_src>

<mosaic_0001>
module attributes {stable_mosaic.version = 11 : i64} {
  func.func @_smooth_loss_kernel(%arg0: i32, %arg1: i32, %arg2: memref<32x128xf32, #tpu.memory_space<vmem>>, %arg3: memref<32x128xi8, #tpu.memory_space<vmem>>, %arg4: memref<1x1x2xf32, #tpu.memory_space<vmem>>, %arg5: memref<1x1xf32, #tpu.memory_space<vmem>>, %arg6: memref<1x1xf32, #tpu.memory_space<vmem>>, %arg7: memref<1x1xf32, #tpu.memory_space<vmem>>, %arg8: memref<1x1xf32, #tpu.memory_space<vmem>>) attributes {dimension_semantics = [#tpu.dimension_semantics<parallel>, #tpu.dimension_semantics<arbitrary>], iteration_bounds = array<i64: 2, 1>, scalar_prefetch = 0 : i64, scratch_operands = 4 : i64, tpu.core_type = #tpu.core_type<tc>, window_params = [{transform_indices = @transform_0, window_bounds = array<i64: 32, 128>}, {transform_indices = @transform_1, window_bounds = array<i64: 32, 128>}, {transform_indices = @transform_2, window_bounds = array<i64: 1, 1, 2>}]} {
    %c0_i32 = arith.constant 0 : i32
    %0 = arith.cmpi eq, %arg1, %c0_i32 : i32
    %1 = arith.extui %0 : i1 to i32
    %cst = arith.constant 0xFF800000 : f32
    %c0_i32_0 = arith.constant 0 : i32
    %2 = arith.cmpi ne, %1, %c0_i32_0 : i32
    scf.if %2 {
      %80 = vector.broadcast %cst : f32 to vector<1x1xf32>
      %c0_45 = arith.constant 0 : index
      %c0_46 = arith.constant 0 : index
      %81 = vector.load %arg5[%c0_45, %c0_46] : memref<1x1xf32, #tpu.memory_space<vmem>>, vector<1x1xf32>
      tpu.vector_store %arg5[%c0_45, %c0_46], %80 {strides = array<i32>} : memref<1x1xf32, #tpu.memory_space<vmem>>, vector<1x1xf32>,
      %cst_47 = arith.constant 0.000000e+00 : f32
      %82 = vector.broadcast %cst_47 : f32 to vector<1x1xf32>
      %c0_48 = arith.constant 0 : index
      %c0_49 = arith.constant 0 : index
      %83 = vector.load %arg6[%c0_48, %c0_49] : memref<1x1xf32, #tpu.memory_space<vmem>>, vector<1x1xf32>
      tpu.vector_store %arg6[%c0_48, %c0_49], %82 {strides = array<i32>} : memref<1x1xf32, #tpu.memory_space<vmem>>, vector<1x1xf32>,
      %84 = vector.broadcast %cst : f32 to vector<1x1xf32>
      %c0_50 = arith.constant 0 : index
      %c0_51 = arith.constant 0 : index
      %85 = vector.load %arg7[%c0_50, %c0_51] : memref<1x1xf32, #tpu.memory_space<vmem>>, vector<1x1xf32>
      tpu.vector_store %arg7[%c0_50, %c0_51], %84 {strides = array<i32>} : memref<1x1xf32, #tpu.memory_space<vmem>>, vector<1x1xf32>,
      %cst_52 = arith.constant 0.000000e+00 : f32
      %86 = vector.broadcast %cst_52 : f32 to vector<1x1xf32>
      %c0_53 = arith.constant 0 : index
      %c0_54 = arith.constant 0 : index
      %87 = vector.load %arg8[%c0_53, %c0_54] : memref<1x1xf32, #tpu.memory_space<vmem>>, vector<1x1xf32>
      tpu.vector_store %arg8[%c0_53, %c0_54], %86 {strides = array<i32>} : memref<1x1xf32, #tpu.memory_space<vmem>>, vector<1x1xf32>,
    } else {
    }
    %c0 = arith.constant 0 : index
    %c0_1 = arith.constant 0 : index
    %3 = vector.load %arg2[%c0, %c0_1] : memref<32x128xf32, #tpu.memory_space<vmem>>, vector<32x128xf32>
    %c0_2 = arith.constant 0 : index
    %c0_3 = arith.constant 0 : index
    %4 = vector.load %arg3[%c0_2, %c0_3] : memref<32x128xi8, #tpu.memory_space<vmem>>, vector<32x128xi8>
    %5 = arith.sitofp %4 : vector<32x128xi8> to vector<32x128xf32>
    %cst_4 = arith.constant 0.000000e+00 : f32
    %6 = vector.broadcast %cst_4 : f32 to vector<32x128xf32>
    %7 = arith.cmpf one, %5, %6 : vector<32x128xf32>
    %cst_5 = arith.constant 0xFF800000 : f32
    %8 = vector.broadcast %cst_5 : f32 to vector<32x128xf32>
    %9 = arith.select %7, %8, %3 : vector<32x128xi1>, vector<32x128xf32>
    %cst_6 = arith.constant 0xFF800000 : f32
    %10 = vector.broadcast %cst_6 : f32 to vector<32x128xf32>
    %11 = arith.select %7, %3, %10 : vector<32x128xi1>, vector<32x128xf32>
    %c0_7 = arith.constant 0 : index
    %c0_8 = arith.constant 0 : index
    %12 = vector.load %arg5[%c0_7, %c0_8] : memref<1x1xf32, #tpu.memory_space<vmem>>, vector<1x1xf32>
    %13 = vector.shape_cast %9 : vector<32x128xf32> to vector<1x32x128xf32>
    %cst_9 = arith.constant dense<0xFF800000> : vector<1xf32>
    %14 = vector.multi_reduction <maximumf>, %13, %cst_9 [1, 2] : vector<1x32x128xf32> to vector<1xf32>
    %15 = vector.shape_cast %14 : vector<1xf32> to vector<1x1x1xf32>
    %16 = vector.extract %15[0, 0, 0] : f32 from vector<1x1x1xf32>
    %17 = vector.broadcast %16 : f32 to vector<1x1xf32>
    %18 = arith.maximumf %12, %17 : vector<1x1xf32>
    %c0_10 = arith.constant 0 : index
    %c0_11 = arith.constant 0 : index
    %19 = vector.load %arg7[%c0_10, %c0_11] : memref<1x1xf32, #tpu.memory_space<vmem>>, vector<1x1xf32>
    %20 = vector.shape_cast %11 : vector<32x128xf32> to vector<1x32x128xf32>
    %cst_12 = arith.constant dense<0xFF800000> : vector<1xf32>
    %21 = vector.multi_reduction <maximumf>, %20, %cst_12 [1, 2] : vector<1x32x128xf32> to vector<1xf32>
    %22 = vector.shape_cast %21 : vector<1xf32> to vector<1x1x1xf32>
    %23 = vector.extract %22[0, 0, 0] : f32 from vector<1x1x1xf32>
    %24 = vector.broadcast %23 : f32 to vector<1x1xf32>
    %25 = arith.maximumf %19, %24 : vector<1x1xf32>
    %26 = vector.shape_cast %25 : vector<1x1xf32> to vector<1x1xf32>
    %27 = vector.broadcast %26 : vector<1x1xf32> to vector<32x128xf32>
    %28 = vector.shape_cast %18 : vector<1x1xf32> to vector<1x1xf32>
    %29 = vector.broadcast %28 : vector<1x1xf32> to vector<32x128xf32>
    %30 = arith.select %7, %27, %29 : vector<32x128xi1>, vector<32x128xf32>
    %cst_13 = arith.constant 0xFF800000 : f32
    %31 = vector.broadcast %cst_13 : f32 to vector<32x128xf32>
    %32 = arith.cmpf oeq, %3, %31 : vector<32x128xf32>
    %33 = arith.subf %3, %30 : vector<32x128xf32>
    %cst_14 = arith.constant 0xFF800000 : f32
    %34 = vector.broadcast %cst_14 : f32 to vector<32x128xf32>
    %35 = arith.select %32, %34, %33 : vector<32x128xi1>, vector<32x128xf32>
    %36 = math.exp %35 : vector<32x128xf32>
    %cst_15 = arith.constant 0.000000e+00 : f32
    %37 = vector.broadcast %cst_15 : f32 to vector<32x128xf32>
    %38 = arith.select %7, %37, %36 : vector<32x128xi1>, vector<32x128xf32>
    %39 = vector.shape_cast %38 : vector<32x128xf32> to vector<1x32x128xf32>
    %cst_16 = arith.constant dense<0.000000e+00> : vector<1xf32>
    %40 = vector.multi_reduction <add>, %39, %cst_16 [1, 2] : vector<1x32x128xf32> to vector<1xf32>
    %41 = vector.shape_cast %40 : vector<1xf32> to vector<1x1x1xf32>
    %42 = vector.extract %41[0, 0, 0] : f32 from vector<1x1x1xf32>
    %43 = vector.broadcast %42 : f32 to vector<1x1xf32>
    %cst_17 = arith.constant 0.000000e+00 : f32
    %44 = vector.broadcast %cst_17 : f32 to vector<32x128xf32>
    %45 = arith.select %7, %36, %44 : vector<32x128xi1>, vector<32x128xf32>
    %46 = vector.shape_cast %45 : vector<32x128xf32> to vector<1x32x128xf32>
    %cst_18 = arith.constant dense<0.000000e+00> : vector<1xf32>
    %47 = vector.multi_reduction <add>, %46, %cst_18 [1, 2] : vector<1x32x128xf32> to vector<1xf32>
    %48 = vector.shape_cast %47 : vector<1xf32> to vector<1x1x1xf32>
    %49 = vector.extract %48[0, 0, 0] : f32 from vector<1x1x1xf32>
    %50 = vector.broadcast %49 : f32 to vector<1x1xf32>
    %c0_19 = arith.constant 0 : index
    %c0_20 = arith.constant 0 : index
    %51 = vector.load %arg5[%c0_19, %c0_20] : memref<1x1xf32, #tpu.memory_space<vmem>>, vector<1x1xf32>
    %cst_21 = arith.constant 0xFF800000 : f32
    %52 = vector.broadcast %cst_21 : f32 to vector<1x1xf32>
    %53 = arith.cmpf oeq, %51, %52 : vector<1x1xf32>
    %c0_22 = arith.constant 0 : index
    %c0_23 = arith.constant 0 : index
    %54 = vector.load %arg5[%c0_22, %c0_23] : memref<1x1xf32, #tpu.memory_space<vmem>>, vector<1x1xf32>
    %55 = arith.subf %54, %18 : vector<1x1xf32>
    %56 = math.exp %55 : vector<1x1xf32>
    %cst_24 = arith.constant 0.000000e+00 : f32
    %57 = vector.broadcast %cst_24 : f32 to vector<1x1xf32>
    %58 = arith.select %53, %57, %56 : vector<1x1xi1>, vector<1x1xf32>
    %c0_25 = arith.constant 0 : index
    %c0_26 = arith.constant 0 : index
    %59 = vector.load %arg7[%c0_25, %c0_26] : memref<1x1xf32, #tpu.memory_space<vmem>>, vector<1x1xf32>
    %cst_27 = arith.constant 0xFF800000 : f32
    %60 = vector.broadcast %cst_27 : f32 to vector<1x1xf32>
    %61 = arith.cmpf oeq, %59, %60 : vector<1x1xf32>
    %c0_28 = arith.constant 0 : index
    %c0_29 = arith.constant 0 : index
    %62 = vector.load %arg7[%c0_28, %c0_29] : memref<1x1xf32, #tpu.memory_space<vmem>>, vector<1x1xf32>
    %63 = arith.subf %62, %25 : vector<1x1xf32>
    %64 = math.exp %63 : vector<1x1xf32>
    %cst_30 = arith.constant 0.000000e+00 : f32
    %65 = vector.broadcast %cst_30 : f32 to vector<1x1xf32>
    %66 = arith.select %61, %65, %64 : vector<1x1xi1>, vector<1x1xf32>
    %c0_31 = arith.constant 0 : index
    %c0_32 = arith.constant 0 : index
    %67 = vector.load %arg6[%c0_31, %c0_32] : memref<1x1xf32, #tpu.memory_space<vmem>>, vector<1x1xf32>
    %68 = arith.mulf %67, %58 : vector<1x1xf32>
    %69 = arith.addf %68, %43 : vector<1x1xf32>
    %c0_33 = arith.constant 0 : index
    %c0_34 = arith.constant 0 : index
    %70 = vector.load %arg6[%c0_33, %c0_34] : memref<1x1xf32, #tpu.memory_space<vmem>>, vector<1x1xf32>
    tpu.vector_store %arg6[%c0_33, %c0_34], %69 {strides = array<i32>} : memref<1x1xf32, #tpu.memory_space<vmem>>, vector<1x1xf32>,
    %c0_35 = arith.constant 0 : index
    %c0_36 = arith.constant 0 : index
    %71 = vector.load %arg8[%c0_35, %c0_36] : memref<1x1xf32, #tpu.memory_space<vmem>>, vector<1x1xf32>
    %72 = arith.mulf %71, %66 : vector<1x1xf32>
    %73 = arith.addf %72, %50 : vector<1x1xf32>
    %c0_37 = arith.constant 0 : index
    %c0_38 = arith.constant 0 : index
    %74 = vector.load %arg8[%c0_37, %c0_38] : memref<1x1xf32, #tpu.memory_space<vmem>>, vector<1x1xf32>
    tpu.vector_store %arg8[%c0_37, %c0_38], %73 {strides = array<i32>} : memref<1x1xf32, #tpu.memory_space<vmem>>, vector<1x1xf32>,
    %c0_39 = arith.constant 0 : index
    %c0_40 = arith.constant 0 : index
    %75 = vector.load %arg5[%c0_39, %c0_40] : memref<1x1xf32, #tpu.memory_space<vmem>>, vector<1x1xf32>
    tpu.vector_store %arg5[%c0_39, %c0_40], %18 {strides = array<i32>} : memref<1x1xf32, #tpu.memory_space<vmem>>, vector<1x1xf32>,
    %c0_41 = arith.constant 0 : index
    %c0_42 = arith.constant 0 : index
    %76 = vector.load %arg7[%c0_41, %c0_42] : memref<1x1xf32, #tpu.memory_space<vmem>>, vector<1x1xf32>
    tpu.vector_store %arg7[%c0_41, %c0_42], %25 {strides = array<i32>} : memref<1x1xf32, #tpu.memory_space<vmem>>, vector<1x1xf32>,
    %c0_i32_43 = arith.constant 0 : i32
    %77 = arith.cmpi eq, %arg1, %c0_i32_43 : i32
    %78 = arith.extui %77 : i1 to i32
    %c0_i32_44 = arith.constant 0 : i32
    %79 = arith.cmpi ne, %78, %c0_i32_44 : i32
    scf.if %79 {
      %c0_45 = arith.constant 0 : index
      %c0_46 = arith.constant 0 : index
      %80 = vector.load %arg5[%c0_45, %c0_46] : memref<1x1xf32, #tpu.memory_space<vmem>>, vector<1x1xf32>
      %c0_47 = arith.constant 0 : index
      %c0_48 = arith.constant 0 : index
      %81 = vector.load %arg6[%c0_47, %c0_48] : memref<1x1xf32, #tpu.memory_space<vmem>>, vector<1x1xf32>
      %82 = math.log %81 : vector<1x1xf32>
      %83 = arith.addf %80, %82 : vector<1x1xf32>
      %c0_49 = arith.constant 0 : index
      %c0_50 = arith.constant 0 : index
      %84 = vector.load %arg7[%c0_49, %c0_50] : memref<1x1xf32, #tpu.memory_space<vmem>>, vector<1x1xf32>
      %c0_51 = arith.constant 0 : index
      %c0_52 = arith.constant 0 : index
      %85 = vector.load %arg8[%c0_51, %c0_52] : memref<1x1xf32, #tpu.memory_space<vmem>>, vector<1x1xf32>
      %86 = math.log %85 : vector<1x1xf32>
      %87 = arith.addf %84, %86 : vector<1x1xf32>
      %c0_53 = arith.constant 0 : index
      %c0_54 = arith.constant 0 : index
      %c0_55 = arith.constant 0 : index
      %88 = vector.load %arg4[%c0_53, %c0_54, %c0_55] : memref<1x1x2xf32, #tpu.memory_space<vmem>>, vector<1x1x1xf32>
      %89 = vector.shape_cast %88 : vector<1x1x1xf32> to vector<1x1xf32>
      %90 = vector.shape_cast %83 : vector<1x1xf32> to vector<1x1x1xf32>
      tpu.vector_store %arg4[%c0_53, %c0_54, %c0_55], %90 {strides = array<i32>} : memref<1x1x2xf32, #tpu.memory_space<vmem>>, vector<1x1x1xf32>,
      %c0_56 = arith.constant 0 : index
      %c0_57 = arith.constant 0 : index
      %c1 = arith.constant 1 : index
      %91 = vector.load %arg4[%c0_56, %c0_57, %c1] : memref<1x1x2xf32, #tpu.memory_space<vmem>>, vector<1x1x1xf32>
      %92 = vector.shape_cast %91 : vector<1x1x1xf32> to vector<1x1xf32>
      %93 = vector.shape_cast %87 : vector<1x1xf32> to vector<1x1x1xf32>
      tpu.vector_store %arg4[%c0_56, %c0_57, %c1], %93 {strides = array<i32>} : memref<1x1x2xf32, #tpu.memory_space<vmem>>, vector<1x1x1xf32>,
    } else {
    }
    return
  }
  func.func @transform_0(%arg0: i32, %arg1: i32) -> (i32, i32) {
    %c1_i32 = arith.constant 1 : i32
    %0 = arith.muli %arg0, %c1_i32 : i32
    %1 = arith.addi %0, %arg1 : i32
    %c0_i32 = arith.constant 0 : i32
    %c0_i32_0 = arith.constant 0 : i32
    return %1, %c0_i32 : i32, i32
  }
  func.func @transform_1(%arg0: i32, %arg1: i32) -> (i32, i32) {
    %c1_i32 = arith.constant 1 : i32
    %0 = arith.muli %arg0, %c1_i32 : i32
    %1 = arith.addi %0, %arg1 : i32
    %c0_i32 = arith.constant 0 : i32
    %c0_i32_0 = arith.constant 0 : i32
    return %1, %c0_i32 : i32, i32
  }
  func.func @transform_2(%arg0: i32, %arg1: i32) -> (i32, i32, i32) {
    %c0_i32 = arith.constant 0 : i32
    %c0_i32_0 = arith.constant 0 : i32
    %c0_i32_1 = arith.constant 0 : i32
    return %arg0, %c0_i32, %c0_i32_0 : i32, i32, i32
  }
}

</mosaic_0001>

<bundles_post_ra>
// kernel: smooth_loss.1
= control target key start
LH: loop header
LB: loop body
LE: loop exit
PB: predicated region body
PF: predicated region fallthrough
CT: control target
= control target key end

     0   :  { %s535_s9 = smov 0   ;;  %s537_s10 = smov 0   ;;  %s666_s0 = inlined_call_operand.vmem [shape: f32[64,128], index: 0, kind: input, shape index: {}]   ;;  %s667_s1 = inlined_call_operand.vmem [shape: s8[64,128], index: 1, kind: input, shape index: {}]   ;;  %s668_s2 = inlined_call_operand.vmem [shape: f32[2,1,2], index: 2, kind: output, shape index: {}]  }
   0x1   :  { %s539_s11 = smov 0  }
   0x2 LB: > { %s24_s12 = sadd.s32 1, %s510_s10  ;;  %p432_p0 = scmp.ge.s32.totalorder %s514_s11, 1  ;;  %s514_s11 = sphi %s539_s11, %s12_s11   ;;  %s510_s10 = sphi %s537_s10, %s670_s10   ;;  %s506_s9 = sphi %s535_s9, %s669_s9  }
   0x3   : > { %p26_p1 = scmp.ge.s32.totalorder %s24_s12, 2  ;;  %p142_p2 = scmp.lt.s32.totalorder %s514_s11, 3 }
   0x5   : > { %s672_s12 = smov (%p26_p1, %s24_s12), 0  ;;  %p143_p3 = pnand %p432_p0, %p142_p2 }
   0x6   : > { %s433_s13 = sshll.u32 (!%p143_p3), %s506_s9, 2  ;;  %p177_p4 = scmp.lt.s32.totalorder (!%p143_p3), %s506_s9, 1 }
   0x7   : > { %146 = sbr.rel (%p143_p3) target bundleno = 687 (0x2af), region = 28  ;;  %p170_p5 = scmp.lt.s32.totalorder (!%p143_p3), %s433_s13, 7 }
   0x8   : > { %s519_s29 = smov (!%p143_p3), 1  }
   0xc   : > { %s674_s9 = smov (!%p177_p4, %s506_s9), 1  ;;  %s676_s13 = smov (!%p170_p5, %s433_s13), 7  ;;  %vm189_vm4 = vcmask 0   ;;  %v516_v27 = vmov -inf   ;;  %v517_v42 = vmov 0.0   ;;  %v518_v43 = vmov 0  }
   0xd   : > { %s435_s14 = sshll.u32 %s674_s9, 3  ;;  %s434_s15 = sshll.u32 %s676_s13, 3  ;;  %190 = vst.msk [vmem:[#allocation2] sm:$0x1] %vm189_vm4, %v516_v27  ;;  %474 = vset.pattern.permute.xlu1 %v518_v43  ;;  %475 = vset.pattern.permute.xlu0 %v518_v43  ;;  %vm359_vm11 = vcmask 8200  }
   0xe   : > { %s180_s18 = scalar_lea.vmem %s667_s1, %s435_s14  ;;  %s173_s21 = scalar_lea.vmem %s666_s0, %s434_s15  ;;  %192 = vst.msk [vmem:[#allocation4] sm:$0x1] %vm189_vm4, %v516_v27 }
   0xf   : > { %v198_v0 = vld [vmem:[%s180_s18] sm:$0xff]  ;;  %v564_v6 = vld [vmem:[%s173_s21 + $0x8] sm:$0xff]  ;;  %v566_v7 = vld [vmem:[%s173_s21 + $0x10] sm:$0xff]  ;;  %191 = vst.msk [vmem:[#allocation3] sm:$0x1] %vm189_vm4, %v517_v42  ;;  %s184_s28 = scalar_lea.vmem %s668_s2, %s674_s9 }
  0x10   : > { %v199_v1 = vunpack.c.0.s8 %v198_v0  ;;  %v200_v2 = vunpack.c.1.s8 %v198_v0  ;;  %v201_v3 = vunpack.c.2.s8 %v198_v0  ;;  %v202_v4 = vunpack.c.3.s8 %v198_v0  ;;  %v562_v5 = vld [vmem:[%s173_s21] sm:$0xff]  ;;  %v568_v8 = vld [vmem:[%s173_s21 + $0x18] sm:$0xff]  ;;  %193 = vst.msk [vmem:[#allocation5] sm:$0x1] %vm189_vm4, %v517_v42 }
  0x11   : > { %vm265_vm7 = vcmp.eq.f32.partialorder %v562_v5, -inf  ;;  %vm266_vm8 = vcmp.eq.f32.partialorder %v564_v6, -inf  ;;  %vm267_vm9 = vcmp.eq.f32.partialorder %v566_v7, -inf  ;;  %vm268_vm10 = vcmp.eq.f32.partialorder %v568_v8, -inf }
  0x12   : > { %v570_v9 = vcvt.s32.f32 %v199_v1  ;;  %v572_v10 = vcvt.s32.f32 %v200_v2  ;;  %v574_v11 = vcvt.s32.f32 %v201_v3  ;;  %v576_v12 = vcvt.s32.f32 %v202_v4 }
  0x14   : > { %vm207_vm0 = vcmp.ne.f32.partialorder %v570_v9, 0.0  ;;  %vm208_vm1 = vcmp.ne.f32.partialorder %v572_v10, 0.0  ;;  %vm209_vm2 = vcmp.ne.f32.partialorder %v574_v11, 0.0  ;;  %vm210_vm3 = vcmp.ne.f32.partialorder %v576_v12, 0.0  ;;  %v219_v44 = vld [vmem:[#allocation2] sm:$0x1] }
  0x15   : > { %v211_v13 = vsel %vm207_vm0, -inf, %v562_v5  ;;  %v212_v14 = vsel %vm208_vm1, -inf, %v564_v6  ;;  %v213_v15 = vsel %vm209_vm2, -inf, %v566_v7  ;;  %v214_v16 = vsel %vm210_vm3, -inf, %v568_v8  ;;  %v234_v49 = vld [vmem:[#allocation4] sm:$0x1] }
  0x16   : > { %v220_v17 = vmax.f32 %v211_v13, %v212_v14  ;;  %v221_v18 = vmax.f32 %v213_v15, %v214_v16  ;;  %v215_v19 = vsel %vm207_vm0, %v562_v5, -inf  ;;  %v216_v20 = vsel %vm208_vm1, %v564_v6, -inf  ;;  %v329_v12 = vld [vmem:[#allocation3] sm:$0x1] }
  0x17   : > { %v217_v21 = vsel %vm209_vm2, %v566_v7, -inf  ;;  %v218_v22 = vsel %vm210_vm3, %v568_v8, -inf  ;;  %v235_v24 = vmax.f32 %v215_v19, %v216_v20  ;;  %vm319_vm5 = vcmp.eq.f32.partialorder %v219_v44, -inf }
  0x18   : > { %v222_v23 = vmax.f32 %v220_v17, %v221_v18  ;;  %v236_v25 = vmax.f32 %v217_v21, %v218_v22  ;;  %vm324_vm6 = vcmp.eq.f32.partialorder %v234_v49, -inf }
  0x1a   : > { %223 = vmax.xlane.f32.xlu0 %v222_v23  ;;  %v237_v26 = vmax.f32 %v235_v24, %v236_v25 }
  0x22   : > { %238 = vmax.xlane.f32.xlu0 %v237_v26 }
  0x8d   : > { %v224_v28 = vpop.xlane.xlu0 %223 }
  0x8e   : > { %v225_v29 = vrot.slane %v224_v28, 4 }
  0x90   : > { %v226_v30 = vmax.f32 %v224_v28, %v225_v29 }
  0x92   : > { %v227_v31 = vrot.slane %v226_v30, 2 }
  0x94   : > { %v228_v32 = vmax.f32 %v226_v30, %v227_v31 }
  0x95   : > { %v239_v33 = vpop.xlane.xlu0 %238 }
  0x96   : > { %v240_v34 = vrot.slane %v239_v33, 4  ;;  %v229_v35 = vrot.slane %v228_v32, 1 }
  0x98   : > { %v241_v36 = vmax.f32 %v239_v33, %v240_v34  ;;  %v230_v37 = vmax.f32 %v228_v32, %v229_v35 }
  0x9a   : > { %v242_v38 = vrot.slane %v241_v36, 2  ;;  %438 = vpush %v230_v37 }
  0x9c   : > { %v243_v39 = vmax.f32 %v241_v36, %v242_v38 }
  0x9e   : > { %v244_v40 = vrot.slane %v243_v39, 1 }
  0xa0   : > { %v245_v41 = vmax.f32 %v243_v39, %v244_v40 }
  0xa2   : > { %440 = vpush %v245_v41 }
  0xcb   : > { %s439_s22 = spop %438 }
  0xcc   : > { %v232_v45 = vstv %s439_s22 }
  0xcd   : > { %v233_v46 = vmax.f32 %v219_v44, %v232_v45 }
  0xcf   : > { %v320_v47 = vsub.f32 %v219_v44, %v233_v46  ;;  %338 = vst.msk [vmem:[#allocation2] sm:$0x1] %vm189_vm4, %v233_v46  ;;  %v256_v57 = vperm.slane %v233_v46, 0 }
  0xd1   : > { %v321_v48 = vmul.f32 1.442695, %v320_v47 }
  0xd3   : > { %476 = vpow2.f32 %v321_v48  ;;  %s441_s23 = spop %440 }
  0xd4   : > { %v247_v50 = vstv %s441_s23 }
  0xd5   : > { %v248_v51 = vmax.f32 %v234_v49, %v247_v50  ;;  %v334_v50 = vld [vmem:[#allocation5] sm:$0x1] }
  0xd7   : > { %v325_v52 = vsub.f32 %v234_v49, %v248_v51  ;;  %339 = vst.msk [vmem:[#allocation4] sm:$0x1] %vm189_vm4, %v248_v51  ;;  %v250_v53 = vperm.slane %v248_v51, 0 }
  0xd9   : > { %v477_v54 = vpop.eup %476  ;;  %v326_v55 = vmul.f32 1.442695, %v325_v52  ;;  %252 = vperm.xlu1 %474, %v250_v53  }
  0xda   : > { %v612_v56 = vsel %vm319_vm5, 0.0, %v477_v54 }
  0xdb   : > { %478 = vpow2.f32 %v326_v55  ;;  %v330_v47 = vmul.f32 %v329_v12, %v612_v56  ;;  %v343_v56 = vld [vmem:[#allocation2] sm:$0x1] }
  0xe1   : > { %v479_v58 = vpop.eup %478  ;;  %258 = vperm.xlu1 %474, %v256_v57  }
  0xe2   : > { %v614_v59 = vsel %vm324_vm6, 0.0, %v479_v58 }
  0xe3   : > { %v335_v51 = vmul.f32 %v334_v50, %v614_v59 }
 0x14b   : > { %v253_v60 = vpop.permute.xlu1 %252 }
 0x153   : > { %v259_v61 = vpop.permute.xlu1 %258 }
 0x154   : > { %v261_v62 = vsel %vm207_vm0, %v253_v60, %v259_v61  ;;  %v262_v63 = vsel %vm208_vm1, %v253_v60, %v259_v61  ;;  %v263_v0 = vsel %vm209_vm2, %v253_v60, %v259_v61  ;;  %v264_v1 = vsel %vm210_vm3, %v253_v60, %v259_v61 }
 0x155   : > { %v269_v2 = vsub.f32 %v562_v5, %v261_v62  ;;  %v270_v3 = vsub.f32 %v564_v6, %v262_v63  ;;  %v271_v4 = vsub.f32 %v566_v7, %v263_v0  ;;  %v272_v13 = vsub.f32 %v568_v8, %v264_v1  ;;  %v348_v62 = vld [vmem:[#allocation4] sm:$0x1] }
 0x157   : > { %v273_v14 = vsel %vm265_vm7, -inf, %v269_v2  ;;  %v274_v15 = vsel %vm266_vm8, -inf, %v270_v3  ;;  %v275_v16 = vsel %vm267_vm9, -inf, %v271_v4  ;;  %v276_v17 = vsel %vm268_vm10, -inf, %v272_v13 }
 0x158   : > { %v277_v18 = vmul.f32 1.442695, %v273_v14  ;;  %v279_v19 = vmul.f32 1.442695, %v274_v15  ;;  %v281_v20 = vmul.f32 1.442695, %v275_v16 }
 0x159   : > { %v283_v21 = vmul.f32 1.442695, %v276_v17 }
 0x15a   : > { %480 = vpow2.f32 %v277_v18 }
 0x15b   : > { %482 = vpow2.f32 %v279_v19 }
 0x15c   : > { %484 = vpow2.f32 %v281_v20 }
 0x15d   : > { %486 = vpow2.f32 %v283_v21 }
 0x160   : > { %v481_v22 = vpop.eup %480 }
 0x161   : > { %v483_v5 = vpop.eup %482  ;;  %v285_v6 = vsel %vm207_vm0, 0.0, %v481_v22  ;;  %v302_v26 = vsel %vm207_vm0, %v481_v22, 0.0 }
 0x162   : > { %v485_v7 = vpop.eup %484  ;;  %v286_v8 = vsel %vm208_vm1, 0.0, %v483_v5  ;;  %v303_v27 = vsel %vm208_vm1, %v483_v5, 0.0 }
 0x163   : > { %v487_v23 = vpop.eup %486  ;;  %v289_v24 = vadd.f32 %v286_v8, %v285_v6  ;;  %v287_v25 = vsel %vm209_vm2, 0.0, %v485_v7  ;;  %v306_v31 = vadd.f32 %v303_v27, %v302_v26  ;;  %v304_v32 = vsel %vm209_vm2, %v485_v7, 0.0 }
 0x164   : > { %v288_v29 = vsel %vm210_vm3, 0.0, %v487_v23  ;;  %v305_v34 = vsel %vm210_vm3, %v487_v23, 0.0 }
 0x165   : > { %v290_v28 = vadd.f32 %v289_v24, %v287_v25  ;;  %v307_v33 = vadd.f32 %v306_v31, %v304_v32 }
 0x167   : > { %v291_v30 = vadd.f32 %v290_v28, %v288_v29  ;;  %v308_v35 = vadd.f32 %v307_v33, %v305_v34 }
 0x169   : > { %292 = vadd.xlane.f32.xlu2 %v291_v30 }
 0x171   : > { %309 = vadd.xlane.f32.xlu2 %v308_v35 }
 0x1dc   : > { %v293_v9 = vpop.xlane.xlu2 %292 }
 0x1dd   : > { %v294_v36 = vrot.slane %v293_v9, 4 }
 0x1df   : > { %v295_v10 = vadd.f32 %v294_v36, %v293_v9 }
 0x1e1   : > { %v296_v37 = vrot.slane %v295_v10, 2 }
 0x1e3   : > { %v297_v38 = vadd.f32 %v296_v37, %v295_v10 }
 0x1e4   : > { %v310_v39 = vpop.xlane.xlu2 %309 }
 0x1e5   : > { %v311_v40 = vrot.slane %v310_v39, 4  ;;  %v298_v41 = vrot.slane %v297_v38, 1 }
 0x1e7   : > { %v312_v42 = vadd.f32 %v311_v40, %v310_v39  ;;  %v299_v43 = vadd.f32 %v298_v41, %v297_v38 }
 0x1e9   : > { %v313_v44 = vrot.slane %v312_v42, 2  ;;  %442 = vpush %v299_v43 }
 0x1eb   : > { %v314_v11 = vadd.f32 %v313_v44, %v312_v42 }
 0x1ed   : > { %v315_v45 = vrot.slane %v314_v11, 1 }
 0x1ef   : > { %v316_v46 = vadd.f32 %v315_v45, %v314_v11 }
 0x1f1   : > { %444 = vpush %v316_v46 }
 0x21a   : > { %s443_s24 = spop %442 }
 0x21b   : > { %v301_v48 = vstv %s443_s24 }
 0x21c   : > { %v331_v49 = vadd.f32 %v330_v47, %v301_v48 }
 0x21e   : > { %333 = vst.msk [vmem:[#allocation3] sm:$0x1] %vm189_vm4, %v331_v49 }
 0x222   : > { %s445_s25 = spop %444 }
 0x223   : > { %v318_v52 = vstv %s445_s25 }
 0x224   : > { %v336_v53 = vadd.f32 %v335_v51, %v318_v52 }
 0x225   : > { %v344_v54 = vld [vmem:[#allocation3] sm:$0x1] }
 0x226   : > { %337 = vst.msk [vmem:[#allocation5] sm:$0x1] %vm189_vm4, %v336_v53  ;;  %488 = vlog2.f32 %v344_v54 }
 0x22c   : > { %v489_v55 = vpop.eup %488 }
 0x22d   : > { %v349_v57 = vld [vmem:[#allocation5] sm:$0x1]  ;;  %v346_v58 = vmul.f32 0.6931472, %v489_v55 }
 0x22e   : > { %490 = vlog2.f32 %v349_v57 }
 0x22f   : > { %v347_v60 = vadd.f32 %v346_v58, %v343_v56 }
 0x231   : > { %353 = vst.msk [vmem:[%s184_s28] sm:$0x1] %vm189_vm4, %v347_v60 }
 0x234   : > { %v491_v61 = vpop.eup %490 }
 0x235   : > { %v351_v59 = vmul.f32 0.6931472, %v491_v61 }
 0x237   : > { %v352_v63 = vadd.f32 %v351_v59, %v348_v62 }
 0x239   : > { %v355_v0 = vperm.slane %v352_v63, 0 }
 0x23b   : > { %356 = vrot.lane.b32.xlu0 %v355_v0, %s519_s29 }
 0x2ad   : > { %v357_v1 = vpop.permute.xlu0 %356 }
 0x2ae   : > { %360 = vst.msk [vmem:[%s184_s28] sm:$0x1] %vm359_vm11, %v357_v1 }
 0x2af PF: > { %s12_s11 = sadd.s32 1, %s514_s11   ;;  %s669_s9 = smov %s510_s10 }
 0x2b0   : > { %p9_p6 = scmp.ge.s32.totalorder %s12_s11, 4   ;;  %s670_s10 = smov %s672_s12 }
 0x2b2   :  { %11 = sbr.rel (!%p9_p6) target bundleno = 2 (0x2), region = 69 }

</bundles_post_ra>
